<compile_context>
chip_gen: v7x
topology: tpu7x:2x2x1
jax: 0.10.0
libtpu: 0.0.40
codegen_flags: <defaults>
</compile_context>

<pallas_src>
import functools

import jax
import jax.numpy as jnp
from jax.experimental import pallas as pl
from jax.experimental.pallas import tpu as pltpu


def _round_up(x, m):
    return (x + m - 1) // m * m


def _mdn_kernel(pt_ref, w1t_ref, b1t_ref, w2t_ref, b2t_ref, wht_ref, bht_ref,
                out_ref, *, pad_c):
    pt = pt_ref[...]                                            # (in_pad, tile_b)

    # trunk: Linear -> ReLU -> Linear -> ReLU  (transposed: h = W^T x + b)
    # layer-1 contraction depth is tiny (in_dim); FLOPs are negligible so we
    # accept the shallow MXU pass rather than padding in_dim to 128.
    h = jnp.dot(w1t_ref[...], pt, preferred_element_type=jnp.float32) + b1t_ref[...]
    h = jnp.maximum(h, 0.0)
    h = jnp.dot(w2t_ref[...], h, preferred_element_type=jnp.float32) + b2t_ref[...]
    h = jnp.maximum(h, 0.0)

    # fused heads: (3*pad_c, hidden) @ (hidden, tile_b)
    heads = jnp.dot(wht_ref[...], h, preferred_element_type=jnp.float32) + bht_ref[...]

    # softmax over the component (sublane) axis of the logits block.
    # Padded logit rows (if any) carry a -1e30 bias -> exp == 0.
    logits = heads[0:pad_c, :]
    m = jnp.max(logits, axis=0, keepdims=True)
    e = jnp.exp(logits - m)
    probs = e / jnp.sum(e, axis=0, keepdims=True)               # exact normalization

    xm = jax.nn.softplus(heads[pad_c:2 * pad_c, :]) + 1e-6
    alpha = jax.nn.softplus(heads[2 * pad_c:3 * pad_c, :]) + 1e-3

    # lane-dense (tile_b-wide, unmasked) stores; sublane offsets are 8-aligned
    out_ref[0:pad_c, :] = probs
    out_ref[pad_c:2 * pad_c, :] = xm
    out_ref[2 * pad_c:3 * pad_c, :] = alpha


def pack_params(params):
    """One-time packing: transpose trunk weights, fuse + sublane-pad the heads."""
    in_dim, hidden = params["w1"].shape
    n_comp = params["b_logits"].shape[-1]
    pad_c = _round_up(n_comp, 8)      # sublane-aligned head blocks
    in_pad = _round_up(in_dim, 8)     # sublane-aligned layer-1 contraction

    w1t = jnp.zeros((hidden, in_pad), jnp.float32)
    w1t = w1t.at[:, :in_dim].set(params["w1"].T.astype(jnp.float32))

    wht = jnp.zeros((3 * pad_c, hidden), jnp.float32)
    wht = wht.at[0:n_comp].set(params["w_logits"].T)
    wht = wht.at[pad_c:pad_c + n_comp].set(params["w_xm"].T)
    wht = wht.at[2 * pad_c:2 * pad_c + n_comp].set(params["w_alpha"].T)

    bht = jnp.zeros((3 * pad_c, 1), jnp.float32)
    bht = bht.at[0:pad_c].set(jnp.float32(-1e30))   # mask padded logit rows
    bht = bht.at[0:n_comp].set(params["b_logits"].reshape(-1, 1))
    bht = bht.at[pad_c:pad_c + n_comp].set(params["b_xm"].reshape(-1, 1))
    bht = bht.at[2 * pad_c:2 * pad_c + n_comp].set(params["b_alpha"].reshape(-1, 1))

    return {
        "w1t": w1t,
        "b1t": params["b1"].reshape(-1, 1).astype(jnp.float32),
        "w2t": params["w2"].T.astype(jnp.float32),
        "b2t": params["b2"].reshape(-1, 1).astype(jnp.float32),
        "wht": wht,
        "bht": bht,
        "in_dim": in_dim,
        "in_pad": in_pad,
        "hidden": hidden,
        "n_comp": n_comp,
        "pad_c": pad_c,
    }


def _choose_tile(b128, requested):
    """Lane-aligned batch tile minimizing (padded rows + per-step overhead)."""
    cap = max(128, min((requested // 128) * 128, b128))
    if b128 >= 256:
        # keep >=2 grid steps so the parallel batch axis can use both v7x cores
        cap = min(cap, max(128, ((b128 // 2) // 128) * 128))
    best = None
    for t in range(128, cap + 1, 128):
        steps = -(-b128 // t)
        padded = steps * t
        cost = padded + 1024 * steps   # rows written + ~per-step overhead (row units)
        key = (cost, -t)
        if best is None or key < best[0]:
            best = (key, t, steps, padded)
    return best[1], best[2], best[3]


def pareto_mdn_forward(p, packed, *, tile_b=2048):
    """Returns (probs, xm, alpha) — the parameters of the Pareto mixture.

    # TODO(synk): PyTorch returns a MixtureSameFamily(Categorical, Pareto)
    # distribution object; distributions have no Pallas equivalent, so the
    # kernel emits the mixture parameters instead.
    """
    B, in_dim = p.shape
    assert in_dim == packed["in_dim"]
    in_pad = packed["in_pad"]
    hidden = packed["hidden"]
    n_comp = packed["n_comp"]
    pad_c = packed["pad_c"]

    b128 = _round_up(max(B, 1), 128)
    tb, steps, b_pad = _choose_tile(b128, tile_b)

    # transposed, sublane/lane padded input: (in_pad, b_pad)
    pt = jnp.zeros((in_pad, b_pad), jnp.float32)
    pt = pt.at[:in_dim, :B].set(p.astype(jnp.float32).T)

    const = lambda i: (0, 0)
    in_specs = [
        pl.BlockSpec((in_pad, tb), lambda i: (0, i)),        # p^T tile
        pl.BlockSpec((hidden, in_pad), const),               # w1^T
        pl.BlockSpec((hidden, 1), const),                    # b1
        pl.BlockSpec((hidden, hidden), const),               # w2^T
        pl.BlockSpec((hidden, 1), const),                    # b2
        pl.BlockSpec((3 * pad_c, hidden), const),            # fused head weights
        pl.BlockSpec((3 * pad_c, 1), const),                 # fused head biases
    ]
    out_specs = pl.BlockSpec((3 * pad_c, tb), lambda i: (0, i))

    flops = 2 * b_pad * (in_pad * hidden + hidden * hidden + hidden * 3 * pad_c)
    # softmax exp (pad_c / column) + two softplus blocks (~2 transcendentals/elem)
    transcendentals = b_pad * 5 * pad_c
    bytes_accessed = 4 * (
        b_pad * in_pad                                       # input read
        + hidden * in_pad + hidden                           # layer-1 params
        + hidden * hidden + hidden                           # layer-2 params
        + 3 * pad_c * hidden + 3 * pad_c                     # head params
        + b_pad * 3 * pad_c                                  # output write
    )

    out = pl.pallas_call(
        functools.partial(_mdn_kernel, pad_c=pad_c),
        out_shape=jax.ShapeDtypeStruct((3 * pad_c, b_pad), jnp.float32),
        grid_spec=pltpu.PrefetchScalarGridSpec(
            num_scalar_prefetch=0,
            grid=(steps,),
            in_specs=in_specs,
            out_specs=out_specs,
        ),
        compiler_params=pltpu.CompilerParams(
            dimension_semantics=("parallel",),
        ),
        cost_estimate=pl.CostEstimate(
            flops=flops,
            transcendentals=transcendentals,
            bytes_accessed=bytes_accessed,
        ),
    )(pt, packed["w1t"], packed["b1t"], packed["w2t"], packed["b2t"],
      packed["wht"], packed["bht"])

    probs = out[0:n_comp, :B].T
    xm = out[pad_c:pad_c + n_comp, :B].T
    alpha = out[2 * pad_c:2 * pad_c + n_comp, :B].T
    return probs, xm, alpha


def init_params(key, in_dim=5, hidden_dim=128, n_components=8):
    """Deterministic synthetic parameters (shapes match the torch module)."""
    ks = jax.random.split(key, 10)

    def linear(kw, kb, fan_in, fan_out):
        bound = 1.0 / jnp.sqrt(float(fan_in))
        w = jax.random.uniform(kw, (fan_in, fan_out), jnp.float32, -bound, bound)
        b = jax.random.uniform(kb, (1, fan_out), jnp.float32, -bound, bound)
        return w, b

    w1, b1 = linear(ks[0], ks[1], in_dim, hidden_dim)
    w2, b2 = linear(ks[2], ks[3], hidden_dim, hidden_dim)
    wl, bl = linear(ks[4], ks[5], hidden_dim, n_components)
    wx, bx = linear(ks[6], ks[7], hidden_dim, n_components)
    wa, ba = linear(ks[8], ks[9], hidden_dim, n_components)

    return {
        "w1": w1, "b1": b1,
        "w2": w2, "b2": b2,
        "w_logits": wl, "b_logits": bl,
        "w_xm": wx, "b_xm": bx,
        "w_alpha": wa, "b_alpha": ba,
    }


def _reference_forward(p, params):
    """Pure-JAX reference (mirrors the PyTorch module)."""
    hp = jax.lax.Precision.HIGHEST
    h = jnp.maximum(jnp.dot(p, params["w1"], precision=hp) + params["b1"], 0.0)
    h = jnp.maximum(jnp.dot(h, params["w2"], precision=hp) + params["b2"], 0.0)
    logits = jnp.dot(h, params["w_logits"], precision=hp) + params["b_logits"]
    probs = jax.nn.softmax(logits, axis=-1)
    xm = jax.nn.softplus(jnp.dot(h, params["w_xm"], precision=hp) + params["b_xm"]) + 1e-6
    alpha = jax.nn.softplus(jnp.dot(h, params["w_alpha"], precision=hp) + params["b_alpha"]) + 1e-3
    return probs, xm, alpha


if __name__ == "__main__":
    key = jax.random.PRNGKey(0)
    k_param, k_input = jax.random.split(key)

    in_dim, hidden_dim, n_components = 5, 128, 8
    batch = 8

    params = init_params(k_param, in_dim, hidden_dim, n_components)
    packed = pack_params(params)               # hoisted: packed once, reused per call
    p = jax.random.normal(k_input, (batch, in_dim), jnp.float32)

    probs, xm, alpha = pareto_mdn_forward(p, packed)
    jax.block_until_ready((probs, xm, alpha))

    # sanity: shapes, mixture weights sum to 1 (exact divide), xm/alpha strictly
    # positive, and agreement with a pure-JAX reference.
    assert probs.shape == (batch, n_components)
    assert xm.shape == (batch, n_components)
    assert alpha.shape == (batch, n_components)
    assert bool(jnp.all(jnp.isfinite(probs)))
    assert bool(jnp.all(jnp.abs(jnp.sum(probs, axis=-1) - 1.0) < 1e-4))
    assert bool(jnp.all(xm > 0.0)) and bool(jnp.all(alpha > 0.0))

    r_probs, r_xm, r_alpha = _reference_forward(p, params)
    assert bool(jnp.all(jnp.abs(probs - r_probs) < 5e-3))
    assert bool(jnp.all(jnp.abs(xm - r_xm) < 5e-3))
    assert bool(jnp.all(jnp.abs(alpha - r_alpha) < 5e-3))

    print("KERNEL_OK")
</pallas_src>

<mosaic_0001>
module attributes {stable_mosaic.version = 11 : i64} {
  func.func @_mdn_kernel(%arg0: i32, %arg1: memref<8x128xf32, #tpu.memory_space<vmem>>, %arg2: memref<128x8xf32, #tpu.memory_space<vmem>>, %arg3: memref<128x1xf32, #tpu.memory_space<vmem>>, %arg4: memref<128x128xf32, #tpu.memory_space<vmem>>, %arg5: memref<128x1xf32, #tpu.memory_space<vmem>>, %arg6: memref<24x128xf32, #tpu.memory_space<vmem>>, %arg7: memref<24x1xf32, #tpu.memory_space<vmem>>, %arg8: memref<24x128xf32, #tpu.memory_space<vmem>>) attributes {dimension_semantics = [#tpu.dimension_semantics<parallel>], iteration_bounds = array<i64: 1>, scalar_prefetch = 0 : i64, scratch_operands = 0 : i64, tpu.core_type = #tpu.core_type<tc>, window_params = [{transform_indices = @transform_0, window_bounds = array<i64: 8, 128>}, {pipeline_mode = #tpu.pipeline_mode<synchronous>, transform_indices = @transform_1, window_bounds = array<i64: 128, 8>}, {pipeline_mode = #tpu.pipeline_mode<synchronous>, transform_indices = @transform_2, window_bounds = array<i64: 128, 1>}, {pipeline_mode = #tpu.pipeline_mode<synchronous>, transform_indices = @transform_3, window_bounds = array<i64: 128, 128>}, {pipeline_mode = #tpu.pipeline_mode<synchronous>, transform_indices = @transform_4, window_bounds = array<i64: 128, 1>}, {pipeline_mode = #tpu.pipeline_mode<synchronous>, transform_indices = @transform_5, window_bounds = array<i64: 24, 128>}, {pipeline_mode = #tpu.pipeline_mode<synchronous>, transform_indices = @transform_6, window_bounds = array<i64: 24, 1>}, {transform_indices = @transform_7, window_bounds = array<i64: 24, 128>}]} {
    %c0 = arith.constant 0 : index
    %c0_0 = arith.constant 0 : index
    %0 = vector.load %arg1[%c0, %c0_0] : memref<8x128xf32, #tpu.memory_space<vmem>>, vector<8x128xf32>
    %c0_1 = arith.constant 0 : index
    %c0_2 = arith.constant 0 : index
    %1 = vector.load %arg2[%c0_1, %c0_2] : memref<128x8xf32, #tpu.memory_space<vmem>>, vector<128x8xf32>
    %cst = arith.constant dense<0.000000e+00> : vector<128x128xf32>
    %2 = tpu.matmul %1, %0, %cst {dimension_numbers = #tpu.dot_dimension_numbers<[1], [0], [0], [1], [0, 0, 1, 1], [], []>} : vector<128x8xf32>, vector<8x128xf32>, vector<128x128xf32> -> vector<128x128xf32>
    %c0_3 = arith.constant 0 : index
    %c0_4 = arith.constant 0 : index
    %3 = vector.load %arg3[%c0_3, %c0_4] : memref<128x1xf32, #tpu.memory_space<vmem>>, vector<128x1xf32>
    %4 = vector.broadcast %3 : vector<128x1xf32> to vector<128x128xf32>
    %5 = arith.addf %2, %4 : vector<128x128xf32>
    %cst_5 = arith.constant 0.000000e+00 : f32
    %6 = vector.broadcast %cst_5 : f32 to vector<128x128xf32>
    %7 = arith.maximumf %5, %6 : vector<128x128xf32>
    %c0_6 = arith.constant 0 : index
    %c0_7 = arith.constant 0 : index
    %8 = vector.load %arg4[%c0_6, %c0_7] : memref<128x128xf32, #tpu.memory_space<vmem>>, vector<128x128xf32>
    %cst_8 = arith.constant dense<0.000000e+00> : vector<128x128xf32>
    %9 = tpu.matmul %8, %7, %cst_8 {dimension_numbers = #tpu.dot_dimension_numbers<[1], [0], [0], [1], [0, 0, 1, 1], [], []>} : vector<128x128xf32>, vector<128x128xf32>, vector<128x128xf32> -> vector<128x128xf32>
    %c0_9 = arith.constant 0 : index
    %c0_10 = arith.constant 0 : index
    %10 = vector.load %arg5[%c0_9, %c0_10] : memref<128x1xf32, #tpu.memory_space<vmem>>, vector<128x1xf32>
    %11 = vector.broadcast %10 : vector<128x1xf32> to vector<128x128xf32>
    %12 = arith.addf %9, %11 : vector<128x128xf32>
    %cst_11 = arith.constant 0.000000e+00 : f32
    %13 = vector.broadcast %cst_11 : f32 to vector<128x128xf32>
    %14 = arith.maximumf %12, %13 : vector<128x128xf32>
    %c0_12 = arith.constant 0 : index
    %c0_13 = arith.constant 0 : index
    %15 = vector.load %arg6[%c0_12, %c0_13] : memref<24x128xf32, #tpu.memory_space<vmem>>, vector<24x128xf32>
    %cst_14 = arith.constant dense<0.000000e+00> : vector<24x128xf32>
    %16 = tpu.matmul %15, %14, %cst_14 {dimension_numbers = #tpu.dot_dimension_numbers<[1], [0], [0], [1], [0, 0, 1, 1], [], []>} : vector<24x128xf32>, vector<128x128xf32>, vector<24x128xf32> -> vector<24x128xf32>
    %c0_15 = arith.constant 0 : index
    %c0_16 = arith.constant 0 : index
    %17 = vector.load %arg7[%c0_15, %c0_16] : memref<24x1xf32, #tpu.memory_space<vmem>>, vector<24x1xf32>
    %18 = vector.broadcast %17 : vector<24x1xf32> to vector<24x128xf32>
    %19 = arith.addf %16, %18 : vector<24x128xf32>
    %20 = vector.extract_strided_slice %19 {offsets = [0, 0], sizes = [8, 128], strides = [1, 1]} : vector<24x128xf32> to vector<8x128xf32>
    %cst_17 = arith.constant dense<0xFF800000> : vector<128xf32>
    %21 = vector.multi_reduction <maximumf>, %20, %cst_17 [0] : vector<8x128xf32> to vector<128xf32>
    %22 = vector.shape_cast %21 : vector<128xf32> to vector<1x128xf32>
    %23 = vector.broadcast %22 : vector<1x128xf32> to vector<8x128xf32>
    %24 = arith.subf %20, %23 : vector<8x128xf32>
    %25 = math.exp %24 : vector<8x128xf32>
    %cst_18 = arith.constant dense<0.000000e+00> : vector<128xf32>
    %26 = vector.multi_reduction <add>, %25, %cst_18 [0] : vector<8x128xf32> to vector<128xf32>
    %27 = vector.shape_cast %26 : vector<128xf32> to vector<1x128xf32>
    %28 = vector.broadcast %27 : vector<1x128xf32> to vector<8x128xf32>
    %29 = arith.divf %25, %28 : vector<8x128xf32>
    %30 = vector.extract_strided_slice %19 {offsets = [8, 0], sizes = [8, 128], strides = [1, 1]} : vector<24x128xf32> to vector<8x128xf32>
    %cst_19 = arith.constant 0.000000e+00 : f32
    %31 = vector.broadcast %cst_19 : f32 to vector<8x128xf32>
    %32 = arith.maximumf %30, %31 : vector<8x128xf32>
    %33 = vector.broadcast %cst_19 : f32 to vector<8x128xf32>
    %34 = arith.subf %30, %33 : vector<8x128xf32>
    %35 = arith.cmpf one, %34, %34 : vector<8x128xf32>
    %36 = vector.broadcast %cst_19 : f32 to vector<8x128xf32>
    %37 = arith.addf %30, %36 : vector<8x128xf32>
    %38 = math.absf %34 : vector<8x128xf32>
    %cst_20 = arith.constant 0.000000e+00 : f32
    %39 = vector.broadcast %cst_20 : f32 to vector<8x128xf32>
    %40 = arith.subf %39, %38 : vector<8x128xf32>
    %41 = math.exp %40 : vector<8x128xf32>
    %42 = math.log1p %41 : vector<8x128xf32>
    %43 = arith.addf %32, %42 : vector<8x128xf32>
    %44 = arith.select %35, %37, %43 : vector<8x128xi1>, vector<8x128xf32>
    %cst_21 = arith.constant 9.99999997E-7 : f32
    %45 = vector.broadcast %cst_21 : f32 to vector<8x128xf32>
    %46 = arith.addf %44, %45 : vector<8x128xf32>
    %47 = vector.extract_strided_slice %19 {offsets = [16, 0], sizes = [8, 128], strides = [1, 1]} : vector<24x128xf32> to vector<8x128xf32>
    %cst_22 = arith.constant 0.000000e+00 : f32
    %48 = vector.broadcast %cst_22 : f32 to vector<8x128xf32>
    %49 = arith.maximumf %47, %48 : vector<8x128xf32>
    %50 = vector.broadcast %cst_22 : f32 to vector<8x128xf32>
    %51 = arith.subf %47, %50 : vector<8x128xf32>
    %52 = arith.cmpf one, %51, %51 : vector<8x128xf32>
    %53 = vector.broadcast %cst_22 : f32 to vector<8x128xf32>
    %54 = arith.addf %47, %53 : vector<8x128xf32>
    %55 = math.absf %51 : vector<8x128xf32>
    %cst_23 = arith.constant 0.000000e+00 : f32
    %56 = vector.broadcast %cst_23 : f32 to vector<8x128xf32>
    %57 = arith.subf %56, %55 : vector<8x128xf32>
    %58 = math.exp %57 : vector<8x128xf32>
    %59 = math.log1p %58 : vector<8x128xf32>
    %60 = arith.addf %49, %59 : vector<8x128xf32>
    %61 = arith.select %52, %54, %60 : vector<8x128xi1>, vector<8x128xf32>
    %cst_24 = arith.constant 1.000000e-03 : f32
    %62 = vector.broadcast %cst_24 : f32 to vector<8x128xf32>
    %63 = arith.addf %61, %62 : vector<8x128xf32>
    %c0_25 = arith.constant 0 : index
    %c0_26 = arith.constant 0 : index
    %64 = vector.load %arg8[%c0_25, %c0_26] : memref<24x128xf32, #tpu.memory_space<vmem>>, vector<8x128xf32>
    tpu.vector_store %arg8[%c0_25, %c0_26], %29 {strides = array<i32>} : memref<24x128xf32, #tpu.memory_space<vmem>>, vector<8x128xf32>,
    %c8 = arith.constant 8 : index
    %c0_27 = arith.constant 0 : index
    %65 = vector.load %arg8[%c8, %c0_27] : memref<24x128xf32, #tpu.memory_space<vmem>>, vector<8x128xf32>
    tpu.vector_store %arg8[%c8, %c0_27], %46 {strides = array<i32>} : memref<24x128xf32, #tpu.memory_space<vmem>>, vector<8x128xf32>,
    %c16 = arith.constant 16 : index
    %c0_28 = arith.constant 0 : index
    %66 = vector.load %arg8[%c16, %c0_28] : memref<24x128xf32, #tpu.memory_space<vmem>>, vector<8x128xf32>
    tpu.vector_store %arg8[%c16, %c0_28], %63 {strides = array<i32>} : memref<24x128xf32, #tpu.memory_space<vmem>>, vector<8x128xf32>,
    return
  }
  func.func @transform_0(%arg0: i32) -> (i32, i32) {
    %c0_i32 = arith.constant 0 : i32
    %c0_i32_0 = arith.constant 0 : i32
    return %c0_i32, %arg0 : i32, i32
  }
  func.func @transform_1(%arg0: i32) -> (i32, i32) {
    %c0_i32 = arith.constant 0 : i32
    %c0_i32_0 = arith.constant 0 : i32
    %c0_i32_1 = arith.constant 0 : i32
    return %c0_i32, %c0_i32_0 : i32, i32
  }
  func.func @transform_2(%arg0: i32) -> (i32, i32) {
    %c0_i32 = arith.constant 0 : i32
    %c0_i32_0 = arith.constant 0 : i32
    %c0_i32_1 = arith.constant 0 : i32
    return %c0_i32, %c0_i32_0 : i32, i32
  }
  func.func @transform_3(%arg0: i32) -> (i32, i32) {
    %c0_i32 = arith.constant 0 : i32
    %c0_i32_0 = arith.constant 0 : i32
    %c0_i32_1 = arith.constant 0 : i32
    return %c0_i32, %c0_i32_0 : i32, i32
  }
  func.func @transform_4(%arg0: i32) -> (i32, i32) {
    %c0_i32 = arith.constant 0 : i32
    %c0_i32_0 = arith.constant 0 : i32
    %c0_i32_1 = arith.constant 0 : i32
    return %c0_i32, %c0_i32_0 : i32, i32
  }
  func.func @transform_5(%arg0: i32) -> (i32, i32) {
    %c0_i32 = arith.constant 0 : i32
    %c0_i32_0 = arith.constant 0 : i32
    %c0_i32_1 = arith.constant 0 : i32
    return %c0_i32, %c0_i32_0 : i32, i32
  }
  func.func @transform_6(%arg0: i32) -> (i32, i32) {
    %c0_i32 = arith.constant 0 : i32
    %c0_i32_0 = arith.constant 0 : i32
    %c0_i32_1 = arith.constant 0 : i32
    return %c0_i32, %c0_i32_0 : i32, i32
  }
  func.func @transform_7(%arg0: i32) -> (i32, i32) {
    %c0_i32 = arith.constant 0 : i32
    %c0_i32_0 = arith.constant 0 : i32
    return %c0_i32, %arg0 : i32, i32
  }
}

</mosaic_0001>

<bundles_post_ra>
// kernel: tpu_custom_call.1
= control target key start
LH: loop header
LB: loop body
LE: loop exit
PB: predicated region body
PF: predicated region fallthrough
CT: control target
= control target key end

     0   :  { %vm140_vm0 = vcmask 64512   ;;  %v1106_v4 = vmov 0   ;;  %s1408_s0 = inlined_call_operand.vmem [shape: f32[8,128], index: 0, kind: input, shape index: {}]   ;;  %s1409_s1 = inlined_call_operand.vmem [shape: f32[128,8], index: 1, kind: input, shape index: {}]   ;;  %s1410_s2 = inlined_call_operand.vmem [shape: f32[128,1], index: 2, kind: input, shape index: {}]   ;;  %s1411_s3 = inlined_call_operand.vmem [shape: f32[128,128], index: 3, kind: input, shape index: {}]   ;;  %s1412_s4 = inlined_call_operand.vmem [shape: f32[128,1], index: 4, kind: input, shape index: {}]   ;;  %s1413_s5 = inlined_call_operand.vmem [shape: f32[24,128], index: 5, kind: input, shape index: {}]   ;;  %s1414_s6 = inlined_call_operand.vmem [shape: f32[24,1], index: 6, kind: input, shape index: {}]   ;;  %s1415_s7 = inlined_call_operand.hbm [shape: f32[24,128], index: 7, kind: output, shape index: {}]  }
   0x1   :  { %v27_v0 = vld [vmem:[%s1408_s0] sm:$0xff]  ;;  %v29_v2 = vld [vmem:[%s1409_s1 + $0x8] sm:$0xff]  ;;  %v30_v3 = vld [vmem:[%s1409_s1 + $0x10] sm:$0xff]  ;;  %1068 = vset.pattern.permute.xlu0 %v1106_v4  ;;  %1069 = vset.pattern.permute.xlu1 %v1106_v4 }
   0x2   :  { %v28_v1 = vld [vmem:[%s1409_s1] sm:$0xff]  ;;  %882 = vmatprep.subr.mxu0 %v27_v0  ;;  %v31_v6 = vld [vmem:[%s1409_s1 + $0x18] sm:$0xff]  ;;  %v45_v8 = vld [vmem:[%s1410_s2 + $0x8] sm:$0xff] }
   0x3   :  { %884 = vmatprep.mubr.msk.f32.mxu0 %vm140_vm0, %v28_v1  ;;  %883 = vmatpush3.msra.mxu0 %v27_v0  ;;  %v44_v5 = vld [vmem:[%s1410_s2] sm:$0xff]  ;;  %v46_v9 = vld [vmem:[%s1410_s2 + $0x10] sm:$0xff]  ;;  %v47_v10 = vld [vmem:[%s1410_s2 + $0x18] sm:$0xff] }
   0x4   :  { %885 = vmatmul.mubr.msk.f32.vlgmr.msra.gmra.mrb[0].mxu0 %vm140_vm0, %v29_v2  ;;  %62 = vperm.xlu0 %1068, %v44_v5   ;;  %v32_v7 = vld [vmem:[%s1409_s1 + $0x20] sm:$0xff]  ;;  %v33_v11 = vld [vmem:[%s1409_s1 + $0x28] sm:$0xff]  ;;  %v34_v12 = vld [vmem:[%s1409_s1 + $0x30] sm:$0xff] }
   0x5   :  { %887 = vmatprep.mubr.msk.f32.mxu0 %vm140_vm0, %v30_v3  ;;  %72 = vperm.xlu1 %1069, %v46_v9   ;;  %v48_v13 = vld [vmem:[%s1410_s2 + $0x20] sm:$0xff]  ;;  %v49_v14 = vld [vmem:[%s1410_s2 + $0x28] sm:$0xff]  ;;  %v35_v15 = vld [vmem:[%s1409_s1 + $0x38] sm:$0xff] }
   0x6   :  { %v36_v16 = vld [vmem:[%s1409_s1 + $0x40] sm:$0xff]  ;;  %v50_v17 = vld [vmem:[%s1410_s2 + $0x30] sm:$0xff]  ;;  %v51_v18 = vld [vmem:[%s1410_s2 + $0x38] sm:$0xff] }
   0x7   :  { %v37_v19 = vld [vmem:[%s1409_s1 + $0x48] sm:$0xff]  ;;  %v38_v20 = vld [vmem:[%s1409_s1 + $0x50] sm:$0xff]  ;;  %v52_v21 = vld [vmem:[%s1410_s2 + $0x40] sm:$0xff] }
   0x8   :  { %888 = vmatmul.mubr.msk.f32.gmra.mrb[2].mxu0 %vm140_vm0, %v31_v6  ;;  %67 = vperm.xlu0 %1068, %v45_v8  }
   0x9   :  { %890 = vmatprep.mubr.msk.f32.mxu0 %vm140_vm0, %v32_v7  ;;  %77 = vperm.xlu1 %1069, %v47_v10  }
   0xc   :  { %891 = vmatmul.mubr.msk.f32.gmra.mrb[4].mxu0 %vm140_vm0, %v33_v11  ;;  %82 = vperm.xlu0 %1068, %v48_v13  }
   0xd   :  { %893 = vmatprep.mubr.msk.f32.mxu0 %vm140_vm0, %v34_v12  ;;  %87 = vperm.xlu1 %1069, %v49_v14  }
  0x10   :  { %894 = vmatmul.mubr.msk.f32.gmra.mrb[6].mxu0 %vm140_vm0, %v35_v15  ;;  %92 = vperm.xlu0 %1068, %v50_v17  }
  0x11   :  { %896 = vmatprep.mubr.msk.f32.mxu0 %vm140_vm0, %v36_v16 }
  0x12   :  { %12 = vsyncpa [#allocation3], 0  ;;  %97 = vperm.xlu1 %1069, %v51_v18   ;;  %v53_v22 = vld [vmem:[%s1410_s2 + $0x48] sm:$0xff]  ;;  %v39_v23 = vld [vmem:[%s1409_s1 + $0x58] sm:$0xff]  ;;  %vm1108_vm1 = vmmov 0  }
  0x13   :  { %v40_v24 = vld [vmem:[%s1409_s1 + $0x60] sm:$0xff]  ;;  %v54_v25 = vld [vmem:[%s1410_s2 + $0x50] sm:$0xff]  ;;  %v55_v26 = vld [vmem:[%s1410_s2 + $0x58] sm:$0xff] }
  0x14   :  { %897 = vmatmul.mubr.msk.f32.gmra.mrb[8].mxu0 %vm140_vm0, %v37_v19  ;;  %102 = vperm.xlu0 %1068, %v52_v21   ;;  %v41_v27 = vld [vmem:[%s1409_s1 + $0x68] sm:$0xff]  ;;  %v42_v28 = vld [vmem:[%s1409_s1 + $0x70] sm:$0xff]  ;;  %v56_v29 = vld [vmem:[%s1410_s2 + $0x60] sm:$0xff] }
  0x15   :  { %899 = vmatprep.mubr.msk.f32.mxu0 %vm140_vm0, %v38_v20  ;;  %v57_v30 = vld [vmem:[%s1410_s2 + $0x68] sm:$0xff]  ;;  %v43_v31 = vld [vmem:[%s1409_s1 + $0x78] sm:$0xff]  ;;  %v58_v32 = vld [vmem:[%s1410_s2 + $0x70] sm:$0xff] }
  0x16   :  { %107 = vperm.xlu1 %1069, %v53_v22   ;;  %v59_v33 = vld [vmem:[%s1410_s2 + $0x78] sm:$0xff]  ;;  %v366_v34 = vld [vmem:[%s1412_s4] sm:$0xff]  ;;  %v367_v35 = vld [vmem:[%s1412_s4 + $0x8] sm:$0xff] }
  0x17   :  { %v368_v36 = vld [vmem:[%s1412_s4 + $0x10] sm:$0xff]  ;;  %v369_v37 = vld [vmem:[%s1412_s4 + $0x18] sm:$0xff]  ;;  %v370_v38 = vld [vmem:[%s1412_s4 + $0x20] sm:$0xff] }
  0x18   :  { %900 = vmatmul.mubr.msk.f32.gmra.mrb[10].mxu0 %vm140_vm0, %v39_v23  ;;  %112 = vperm.xlu0 %1068, %v54_v25   ;;  %v371_v39 = vld [vmem:[%s1412_s4 + $0x28] sm:$0xff]  ;;  %v372_v40 = vld [vmem:[%s1412_s4 + $0x30] sm:$0xff]  ;;  %v373_v41 = vld [vmem:[%s1412_s4 + $0x38] sm:$0xff] }
  0x19   :  { %902 = vmatprep.mubr.msk.f32.mxu0 %vm140_vm0, %v40_v24  ;;  %v374_v42 = vld [vmem:[%s1412_s4 + $0x40] sm:$0xff]  ;;  %v375_v43 = vld [vmem:[%s1412_s4 + $0x48] sm:$0xff]  ;;  %v376_v44 = vld [vmem:[%s1412_s4 + $0x50] sm:$0xff] }
  0x1a   :  { %117 = vperm.xlu1 %1069, %v55_v26   ;;  %v377_v45 = vld [vmem:[%s1412_s4 + $0x58] sm:$0xff]  ;;  %v378_v46 = vld [vmem:[%s1412_s4 + $0x60] sm:$0xff]  ;;  %v379_v47 = vld [vmem:[%s1412_s4 + $0x68] sm:$0xff] }
  0x1b   :  { %v380_v48 = vld [vmem:[%s1412_s4 + $0x70] sm:$0xff]  ;;  %v381_v49 = vld [vmem:[%s1412_s4 + $0x78] sm:$0xff]  ;;  %v626_v50 = vld [vmem:[%s1414_s6] sm:$0xff] }
  0x1c   :  { %903 = vmatmul.mubr.msk.f32.gmra.mrb[12].mxu0 %vm140_vm0, %v41_v27  ;;  %122 = vperm.xlu0 %1068, %v56_v29   ;;  %v627_v51 = vld [vmem:[%s1414_s6 + $0x8] sm:$0xff]  ;;  %v628_v52 = vld [vmem:[%s1414_s6 + $0x10] sm:$0xff]  ;;  %v350_v53 = vld [vmem:[%s1411_s3] sm:$0xff] }
  0x1d   :  { %905 = vmatprep.mubr.msk.f32.mxu0 %vm140_vm0, %v42_v28  ;;  %940 = vmatprep.mubr.f32.mxu1 %v350_v53 }
  0x1e   :  { %127 = vperm.xlu1 %1069, %v57_v30  }
  0x20   :  { %906 = vmatmul.mubr.msk.f32.gmra.mrb[14].mxu0 %vm140_vm0, %v43_v31  ;;  %132 = vperm.xlu0 %1068, %v58_v32  }
  0x22   :  { %137 = vperm.xlu1 %1069, %v59_v33  }
  0x24   :  { %384 = vperm.xlu0 %1068, %v366_v34  }
  0x26   :  { %389 = vperm.xlu1 %1069, %v367_v35  }
  0x28   :  { %394 = vperm.xlu0 %1068, %v368_v36  }
  0x2a   :  { %399 = vperm.xlu1 %1069, %v369_v37  }
  0x2c   :  { %404 = vperm.xlu0 %1068, %v370_v38  }
  0x2e   :  { %409 = vperm.xlu1 %1069, %v371_v39  }
  0x30   :  { %414 = vperm.xlu0 %1068, %v372_v40  }
  0x32   :  { %419 = vperm.xlu1 %1069, %v373_v41  }
  0x34   :  { %424 = vperm.xlu0 %1068, %v374_v42  }
  0x36   :  { %429 = vperm.xlu1 %1069, %v375_v43  }
  0x38   :  { %434 = vperm.xlu0 %1068, %v376_v44  }
  0x3a   :  { %439 = vperm.xlu1 %1069, %v377_v45  }
  0x3c   :  { %444 = vperm.xlu0 %1068, %v378_v46  }
  0x3e   :  { %449 = vperm.xlu1 %1069, %v379_v47  }
  0x40   :  { %454 = vperm.xlu0 %1068, %v380_v48  }
  0x42   :  { %459 = vperm.xlu1 %1069, %v381_v49  }
  0x44   :  { %631 = vperm.xlu0 %1068, %v626_v50  }
  0x46   :  { %636 = vperm.xlu1 %1069, %v627_v51  }
  0x48   :  { %641 = vperm.xlu0 %1068, %v628_v52  }
  0x83   :  { %v63_v55 = vpop.permute.xlu0 %62 }
  0x84   :  { %v73_v54 = vpop.permute.xlu1 %72 }
  0x87   :  { %v68_v57 = vpop.permute.xlu0 %67 }
  0x88   :  { %v78_v56 = vpop.permute.xlu1 %77 }
  0x8b   :  { %v83_v59 = vpop.permute.xlu0 %82 }
  0x8c   :  { %v88_v58 = vpop.permute.xlu1 %87 }
  0x8f   :  { %v93_v4 = vpop.permute.xlu0 %92 }
  0x91   :  { %v98_v1 = vpop.permute.xlu1 %97 }
  0x93   :  { %v103_v17 = vpop.permute.xlu0 %102 }
  0x95   :  { %v108_v14 = vpop.permute.xlu1 %107 }
  0x97   :  { %v113_v29 = vpop.permute.xlu0 %112 }
  0x99   :  { %v118_v26 = vpop.permute.xlu1 %117 }
  0x9b   :  { %v123_v42 = vpop.permute.xlu0 %122 }
  0x9d   :  { %v128_v39 = vpop.permute.xlu1 %127 }
  0xa1   :  { %v138_v51 = vpop.permute.xlu1 %137 }
  0xd7   :  { %v886_v60 = vpop.f32.mrb[0].mxu0 }
  0xd8   :  { %v261_v61 = vadd.f32 %v886_v60, %v68_v57  ;;  %v255_v62 = vpop.f32.mrb[1].mxu0 }
  0xd9   :  { %v256_v63 = vadd.f32 %v255_v62, %v63_v55  ;;  %v351_v62 = vld [vmem:[%s1411_s3 + $0x8] sm:$0xff] }
  0xda   :  { %v335_v0 = vmax.f32 %v261_v61, 0.0 }
  0xdb   :  { %v334_v2 = vmax.f32 %v256_v63, 0.0  ;;  %v889_v3 = vpop.f32.mrb[2].mxu0  ;;  %v352_v63 = vld [vmem:[%s1411_s3 + $0x10] sm:$0xff] }
  0xdc   :  { %v271_v5 = vadd.f32 %v889_v3, %v78_v56  ;;  %v265_v6 = vpop.f32.mrb[3].mxu0  ;;  %v356_v3 = vld [vmem:[%s1411_s3 + $0x30] sm:$0xff] }
  0xdd   :  { %v266_v7 = vadd.f32 %v265_v6, %v73_v54  ;;  %v1005_v8 = vpack.c.bf16 %v335_v0, %v334_v2  ;;  %v133_v54 = vpop.permute.xlu0 %132  ;;  %v353_v0 = vld [vmem:[%s1411_s3 + $0x18] sm:$0xff]  ;;  %v355_v2 = vld [vmem:[%s1411_s3 + $0x28] sm:$0xff] }
  0xde   :  { %v337_v9 = vmax.f32 %v271_v5, 0.0  ;;  %v358_v5 = vld [vmem:[%s1411_s3 + $0x40] sm:$0xff]  ;;  %v359_v6 = vld [vmem:[%s1411_s3 + $0x48] sm:$0xff] }
  0xdf   :  { %v336_v10 = vmax.f32 %v266_v7, 0.0  ;;  %v892_v11 = vpop.f32.mrb[4].mxu0  ;;  %1006 = vmatprep.subr.bf16.mxu1 %v1005_v8  ;;  %v360_v7 = vld [vmem:[%s1411_s3 + $0x50] sm:$0xff] }
  0xe0   :  { %v281_v12 = vadd.f32 %v892_v11, %v88_v58  ;;  %v275_v13 = vpop.f32.mrb[5].mxu0  ;;  %1008 = vmatpush3.bf16.msra.mxu1 %v1005_v8  ;;  %v361_v8 = vld [vmem:[%s1411_s3 + $0x58] sm:$0xff]  ;;  %v364_v11 = vld [vmem:[%s1411_s3 + $0x70] sm:$0xff] }
  0xe1   :  { %v1009_v15 = vpack.c.bf16 %v337_v9, %v336_v10  ;;  %v276_v16 = vadd.f32 %v275_v13, %v83_v59  ;;  %v362_v9 = vld [vmem:[%s1411_s3 + $0x60] sm:$0xff]  ;;  %v363_v10 = vld [vmem:[%s1411_s3 + $0x68] sm:$0xff]  ;;  %v1107_v13 = vmov 0.0|0.0  }
  0xe2   :  { %v339_v18 = vmax.f32 %v281_v12, 0.0  ;;  %v365_v12 = vld [vmem:[%s1411_s3 + $0x78] sm:$0xff]  ;;  %1037 = vmatprep.subr.bf16.mxu0 %v1107_v13 }
  0xe3   :  { %v338_v19 = vmax.f32 %v276_v16, 0.0  ;;  %v895_v20 = vpop.f32.mrb[6].mxu0  ;;  %1010 = vmatprep.subr.bf16.mxu1 %v1009_v15  ;;  %v385_v16 = vpop.permute.xlu0 %384 }
  0xe4   :  { %v291_v21 = vadd.f32 %v895_v20, %v98_v1  ;;  %v285_v22 = vpop.f32.mrb[7].mxu0  ;;  %1012 = vmatpush3.bf16.msra.mxu1 %v1009_v15  ;;  %v354_v1 = vld [vmem:[%s1411_s3 + $0x20] sm:$0xff]  ;;  %v390_v15 = vpop.permute.xlu1 %389 }
  0xe5   :  { %v1013_v23 = vpack.c.bf16 %v339_v18, %v338_v19  ;;  %v286_v24 = vadd.f32 %v285_v22, %v93_v4  ;;  %v357_v4 = vld [vmem:[%s1411_s3 + $0x38] sm:$0xff] }
  0xe6   :  { %v341_v25 = vmax.f32 %v291_v21, 0.0 }
  0xe7   :  { %v340_v27 = vmax.f32 %v286_v24, 0.0  ;;  %v898_v28 = vpop.f32.mrb[8].mxu0  ;;  %1014 = vmatprep.subr.bf16.mxu1 %v1013_v23  ;;  %v395_v18 = vpop.permute.xlu0 %394 }
  0xe8   :  { %v301_v30 = vadd.f32 %v898_v28, %v108_v14  ;;  %v295_v31 = vpop.f32.mrb[9].mxu0  ;;  %1016 = vmatpush3.bf16.msra.mxu1 %v1013_v23  ;;  %v1109_v14 = vmov 0.0  }
  0xe9   :  { %v1017_v32 = vpack.c.bf16 %v341_v25, %v340_v27  ;;  %v296_v33 = vadd.f32 %v295_v31, %v103_v17  ;;  %996 = vmatprep.mubr.msk.f32.mxu0 %vm1108_vm1, %v1109_v14  ;;  %v400_v17 = vpop.permute.xlu1 %399 }
  0xea   :  { %v343_v34 = vmax.f32 %v301_v30, 0.0 }
  0xeb   :  { %v342_v35 = vmax.f32 %v296_v33, 0.0  ;;  %v901_v36 = vpop.f32.mrb[10].mxu0  ;;  %1018 = vmatprep.subr.bf16.mxu1 %v1017_v32  ;;  %v405_v20 = vpop.permute.xlu0 %404 }
  0xec   :  { %v311_v37 = vadd.f32 %v901_v36, %v118_v26  ;;  %v305_v38 = vpop.f32.mrb[11].mxu0  ;;  %1020 = vmatpush3.bf16.msra.mxu1 %v1017_v32 }
  0xed   :  { %v1021_v40 = vpack.c.bf16 %v343_v34, %v342_v35  ;;  %v306_v41 = vadd.f32 %v305_v38, %v113_v29  ;;  %v410_v19 = vpop.permute.xlu1 %409 }
  0xee   :  { %v345_v43 = vmax.f32 %v311_v37, 0.0 }
  0xef   :  { %v344_v44 = vmax.f32 %v306_v41, 0.0  ;;  %v904_v45 = vpop.f32.mrb[12].mxu0  ;;  %1022 = vmatprep.subr.bf16.mxu1 %v1021_v40  ;;  %v415_v29 = vpop.permute.xlu0 %414 }
  0xf0   :  { %v321_v46 = vadd.f32 %v904_v45, %v128_v39  ;;  %v315_v47 = vpop.f32.mrb[13].mxu0  ;;  %1024 = vmatpush3.bf16.msra.mxu1 %v1021_v40 }
  0xf1   :  { %v1025_v48 = vpack.c.bf16 %v345_v43, %v344_v44  ;;  %v316_v49 = vadd.f32 %v315_v47, %v123_v42  ;;  %v420_v26 = vpop.permute.xlu1 %419 }
  0xf2   :  { %v347_v50 = vmax.f32 %v321_v46, 0.0 }
  0xf3   :  { %v346_v52 = vmax.f32 %v316_v49, 0.0  ;;  %v907_v53 = vpop.f32.mrb[14].mxu0  ;;  %1026 = vmatprep.subr.bf16.mxu1 %v1025_v48  ;;  %v425_v42 = vpop.permute.xlu0 %424 }
  0xf4   :  { %v331_v55 = vadd.f32 %v907_v53, %v138_v51  ;;  %v325_v56 = vpop.f32.mrb[15].mxu0  ;;  %1028 = vmatpush3.bf16.msra.mxu1 %v1025_v48 }
  0xf5   :  { %v1029_v57 = vpack.c.bf16 %v347_v50, %v346_v52  ;;  %v326_v58 = vadd.f32 %v325_v56, %v133_v54  ;;  %v430_v39 = vpop.permute.xlu1 %429 }
  0xf6   :  { %v349_v59 = vmax.f32 %v331_v55, 0.0 }
  0xf7   :  { %v348_v60 = vmax.f32 %v326_v58, 0.0  ;;  %1030 = vmatprep.subr.bf16.mxu1 %v1029_v57  ;;  %v435_v54 = vpop.permute.xlu0 %434 }
  0xf8   :  { %1032 = vmatpush3.bf16.msra.mxu1 %v1029_v57 }
  0xf9   :  { %v1033_v61 = vpack.c.bf16 %v349_v59, %v348_v60  ;;  %v440_v51 = vpop.permute.xlu1 %439 }
  0xfb   :  { %1034 = vmatprep.subr.bf16.mxu1 %v1033_v61 }
  0xfc   :  { %1036 = vmatpush3.bf16.msra.mxu1 %v1033_v61 }
  0xff   :  { %941 = vmatmul.mubr.f32.vlgmr.msra.gmra.mrb[0].mxu1 %v351_v62 }
 0x100   :  { %943 = vmatprep.mubr.f32.mxu1 %v352_v63 }
 0x103   :  { %944 = vmatmul.mubr.f32.gmra.mrb[2].mxu1 %v353_v0  ;;  %v450_v0 = vpop.permute.xlu1 %449 }
 0x104   :  { %946 = vmatprep.mubr.f32.mxu1 %v354_v1 }
 0x107   :  { %947 = vmatmul.mubr.f32.gmra.mrb[4].mxu1 %v355_v2 }
 0x108   :  { %949 = vmatprep.mubr.f32.mxu1 %v356_v3  ;;  %v445_v3 = vpop.permute.xlu0 %444 }
 0x10b   :  { %950 = vmatmul.mubr.f32.gmra.mrb[6].mxu1 %v357_v4 }
 0x10c   :  { %952 = vmatprep.mubr.f32.mxu1 %v358_v5 }
 0x10f   :  { %953 = vmatmul.mubr.f32.gmra.mrb[8].mxu1 %v359_v6 }
 0x110   :  { %955 = vmatprep.mubr.f32.mxu1 %v360_v7 }
 0x113   :  { %956 = vmatmul.mubr.f32.gmra.mrb[10].mxu1 %v361_v8 }
 0x114   :  { %958 = vmatprep.mubr.f32.mxu1 %v362_v9 }
 0x117   :  { %959 = vmatmul.mubr.f32.gmra.mrb[12].mxu1 %v363_v10 }
 0x118   :  { %961 = vmatprep.mubr.f32.mxu1 %v364_v11 }
 0x11b   :  { %962 = vmatmul.mubr.f32.gmra.mrb[14].mxu1 %v365_v12  ;;  %v460_v12 = vpop.permute.xlu1 %459 }
 0x1d2   :  { %v942_v21 = vpop.f32.mrb[0].mxu1 }
 0x1d3   :  { %v534_v22 = vadd.f32 %v942_v21, %v390_v15  ;;  %v528_v23 = vpop.f32.mrb[1].mxu1 }
 0x1d4   :  { %v529_v24 = vadd.f32 %v528_v23, %v385_v16 }
 0x1d5   :  { %v608_v25 = vmax.f32 %v534_v22, 0.0 }
 0x1d6   :  { %v607_v27 = vmax.f32 %v529_v24, 0.0  ;;  %v945_v28 = vpop.f32.mrb[2].mxu1 }
 0x1d7   :  { %v544_v30 = vadd.f32 %v945_v28, %v400_v17  ;;  %v538_v31 = vpop.f32.mrb[3].mxu1  ;;  %v455_v17 = vpop.permute.xlu0 %454 }
 0x1d8   :  { %v1038_v32 = vpack.c.bf16 %v608_v25, %v607_v27  ;;  %v539_v33 = vadd.f32 %v538_v31, %v395_v18  ;;  %v623_v25 = vld [vmem:[%s1413_s5] sm:$0xff] }
 0x1d9   :  { %v610_v34 = vmax.f32 %v544_v30, 0.0 }
 0x1da   :  { %v609_v35 = vmax.f32 %v539_v33, 0.0  ;;  %v948_v36 = vpop.f32.mrb[4].mxu1  ;;  %1039 = vmatpush3.bf16.msra.mxu0 %v1038_v32  ;;  %v637_v32 = vpop.permute.xlu1 %636 }
 0x1db   :  { %v554_v37 = vadd.f32 %v948_v36, %v410_v19  ;;  %v548_v38 = vpop.f32.mrb[5].mxu1  ;;  %1040 = vmatprep.subr.bf16.mxu0 %v1107_v13  ;;  %v632_v27 = vpop.permute.xlu0 %631 }
 0x1dc   :  { %v1041_v40 = vpack.c.bf16 %v610_v34, %v609_v35  ;;  %v549_v41 = vadd.f32 %v548_v38, %v405_v20 }
 0x1dd   :  { %v612_v43 = vmax.f32 %v554_v37, 0.0 }
 0x1de   :  { %v611_v44 = vmax.f32 %v549_v41, 0.0  ;;  %v951_v45 = vpop.f32.mrb[6].mxu1  ;;  %1042 = vmatpush3.bf16.msra.mxu0 %v1041_v40 }
 0x1df   :  { %v564_v46 = vadd.f32 %v951_v45, %v420_v26  ;;  %v558_v47 = vpop.f32.mrb[7].mxu1  ;;  %1043 = vmatprep.subr.bf16.mxu0 %v1107_v13  ;;  %v624_v26 = vld [vmem:[%s1413_s5 + $0x8] sm:$0xff] }
 0x1e0   :  { %v1044_v48 = vpack.c.bf16 %v612_v43, %v611_v44  ;;  %v559_v49 = vadd.f32 %v558_v47, %v415_v29 }
 0x1e1   :  { %v614_v50 = vmax.f32 %v564_v46, 0.0 }
 0x1e2   :  { %v613_v52 = vmax.f32 %v559_v49, 0.0  ;;  %v954_v53 = vpop.f32.mrb[8].mxu1  ;;  %1045 = vmatpush3.bf16.msra.mxu0 %v1044_v48 }
 0x1e3   :  { %v574_v55 = vadd.f32 %v954_v53, %v430_v39  ;;  %v568_v56 = vpop.f32.mrb[9].mxu1  ;;  %1046 = vmatprep.subr.bf16.mxu0 %v1107_v13  ;;  %v642_v39 = vpop.permute.xlu0 %641 }
 0x1e4   :  { %v1047_v57 = vpack.c.bf16 %v614_v50, %v613_v52  ;;  %v569_v58 = vadd.f32 %v568_v56, %v425_v42 }
 0x1e5   :  { %v616_v59 = vmax.f32 %v574_v55, 0.0 }
 0x1e6   :  { %v615_v60 = vmax.f32 %v569_v58, 0.0  ;;  %v957_v61 = vpop.f32.mrb[10].mxu1  ;;  %1048 = vmatpush3.bf16.msra.mxu0 %v1047_v57 }
 0x1e7   :  { %v584_v62 = vadd.f32 %v957_v61, %v440_v51  ;;  %v578_v63 = vpop.f32.mrb[11].mxu1  ;;  %1049 = vmatprep.subr.bf16.mxu0 %v1107_v13 }
 0x1e8   :  { %v1050_v1 = vpack.c.bf16 %v616_v59, %v615_v60  ;;  %v579_v2 = vadd.f32 %v578_v63, %v435_v54 }
 0x1e9   :  { %v618_v4 = vmax.f32 %v584_v62, 0.0 }
 0x1ea   :  { %v617_v5 = vmax.f32 %v579_v2, 0.0  ;;  %v960_v6 = vpop.f32.mrb[12].mxu1  ;;  %1051 = vmatpush3.bf16.msra.mxu0 %v1050_v1 }
 0x1eb   :  { %v594_v7 = vadd.f32 %v960_v6, %v450_v0  ;;  %v588_v8 = vpop.f32.mrb[13].mxu1  ;;  %1052 = vmatprep.subr.bf16.mxu0 %v1107_v13 }
 0x1ec   :  { %v1053_v9 = vpack.c.bf16 %v618_v4, %v617_v5  ;;  %v589_v10 = vadd.f32 %v588_v8, %v445_v3 }
 0x1ed   :  { %v620_v11 = vmax.f32 %v594_v7, 0.0 }
 0x1ee   :  { %v619_v15 = vmax.f32 %v589_v10, 0.0  ;;  %v963_v16 = vpop.f32.mrb[14].mxu1  ;;  %1054 = vmatpush3.bf16.msra.mxu0 %v1053_v9 }
 0x1ef   :  { %v604_v18 = vadd.f32 %v963_v16, %v460_v12  ;;  %v598_v19 = vpop.f32.mrb[15].mxu1  ;;  %1055 = vmatprep.subr.bf16.mxu0 %v1107_v13 }
 0x1f0   :  { %v1056_v20 = vpack.c.bf16 %v620_v11, %v619_v15  ;;  %v599_v21 = vadd.f32 %v598_v19, %v455_v17 }
 0x1f1   :  { %v622_v22 = vmax.f32 %v604_v18, 0.0 }
 0x1f2   :  { %v621_v23 = vmax.f32 %v599_v21, 0.0  ;;  %1057 = vmatpush3.bf16.msra.mxu0 %v1056_v20 }
 0x1f3   :  { %1058 = vmatprep.subr.bf16.mxu0 %v1107_v13  ;;  %v625_v13 = vld [vmem:[%s1413_s5 + $0x10] sm:$0xff]  ;;  %s1110_s5 = smov [#allocation2]  }
 0x1f4   :  { %v1059_v24 = vpack.c.bf16 %v622_v22, %v621_v23  ;;  %s787_s11 = sshll.u32 %s1110_s5, 4  ;;  %s788_s11 = int_to_ptr.vmem [resolvable:$true] %s787_s11 }
 0x1f5   :  { %s1082_s12 = scalar_lea.vmem %s788_s11, 384  ;;  %p1087_p1 = scmp.lt.s32.totalorder %s788_s11, %s788_s11 }
 0x1f6   :  { %1060 = vmatpush3.bf16.msra.mxu0 %v1059_v24  ;;  %p1083_p0 = scmp.ne.s32.totalorder %s788_s11, %s1082_s12  ;;  %p1088_p2 = scmp.lt.s32.totalorder %s1082_s12, %s1082_s12 }
 0x1f8   :  { %p1089_p3 = por %p1088_p2, %p1087_p1 }
 0x1f9   :  { %997 = vmatmul.mubr.f32.vlgmr.msra.gmra.mrb[16].mxu0 %v623_v25 }
 0x1fa   :  { %999 = vmatprep.mubr.msk.f32.mxu0 %vm1108_vm1, %v1109_v14  ;;  %p1090_p4 = pnand %p1089_p3, %p1083_p0 }
 0x1fd   :  { %1000 = vmatmul.mubr.f32.gmra.mrb[18].mxu0 %v624_v26 }
 0x1fe   :  { %1002 = vmatprep.mubr.msk.f32.mxu0 %vm1108_vm1, %v1109_v14 }
 0x201   :  { %1003 = vmatmul.mubr.f32.gmra.mrb[20].mxu0 %v625_v13 }
 0x2cc   :  { %v710_v28 = vpop.f32.mrb[16].mxu0 }
 0x2cd   :  { %v711_v29 = vadd.f32 %v710_v28, %v632_v27  ;;  %v998_v30 = vpop.f32.mrb[17].mxu0 }
 0x2cf   :  { %v724_v31 = vrot.slane %v711_v29, 4 }
 0x2d0   :  { %v715_v33 = vpop.f32.mrb[18].mxu0 }
 0x2d1   :  { %v725_v34 = vmax.f32 %v711_v29, %v724_v31  ;;  %v716_v35 = vadd.f32 %v715_v33, %v637_v32  ;;  %v1001_v36 = vpop.f32.mrb[19].mxu0 }
 0x2d3   :  { %v726_v37 = vrot.slane %v725_v34, 2  ;;  %v744_v38 = vand.u32 2147483647, %v716_v35  ;;  %v741_v4 = vmax.f32 %v716_v35, 0.0  ;;  %vm742_vm3 = vcmp.ne.f32.partialorder %v716_v35, %v716_v35 }
 0x2d4   :  { %v720_v40 = vpop.f32.mrb[20].mxu0 }
 0x2d5   :  { %v727_v14 = vmax.f32 %v725_v34, %v726_v37  ;;  %v745_v41 = vsub.f32 0.0, %v744_v38  ;;  %v721_v42 = vadd.f32 %v720_v40, %v642_v39  ;;  %v1004_v43 = vpop.f32.mrb[21].mxu0 }
 0x2d7   :  { %v728_v44 = vrot.slane %v727_v14, 1  ;;  %v746_v45 = vmul.f32 1.442695, %v745_v41  ;;  %v763_v46 = vand.u32 2147483647, %v721_v42  ;;  %v760_v18 = vmax.f32 %v721_v42, 0.0 }
 0x2d8   :  { %vm761_vm5 = vcmp.ne.f32.partialorder %v721_v42, %v721_v42 }
 0x2d9   :  { %v729_v47 = vmax.f32 %v727_v14, %v728_v44  ;;  %1070 = vpow2.f32 %v746_v45  ;;  %v764_v48 = vsub.f32 0.0, %v763_v46 }
 0x2db   :  { %v730_v49 = vsub.f32 %v711_v29, %v729_v47  ;;  %v765_v50 = vmul.f32 1.442695, %v764_v48 }
 0x2dd   :  { %v731_v51 = vmul.f32 1.442695, %v730_v49  ;;  %1072 = vpow2.f32 %v765_v50 }
 0x2df   :  { %1074 = vpow2.f32 %v731_v51 }
 0x2e3   :  { %v1071_v52 = vpop.eup %1070 }
 0x2e4   :  { %v748_v53 = vadd.f32 1.0, %v1071_v52  ;;  %v751_v56 = vmul.f32 -0.5, %v1071_v52  ;;  %v754_v61 = vand.u32 2147483647, %v1071_v52 }
 0x2e6   :  { %1076 = vlog2.f32 %v748_v53  ;;  %v752_v60 = vadd.f32 1.0, %v751_v56  ;;  %vm755_vm2 = vcmp.lt.f32.partialorder %v754_v61, 0.0004427343 }
 0x2e7   :  { %v1073_v54 = vpop.eup %1072 }
 0x2e8   :  { %v767_v57 = vadd.f32 1.0, %v1073_v54  ;;  %v770_v62 = vmul.f32 -0.5, %v1073_v54  ;;  %v753_v3 = vmul.f32 %v1071_v52, %v752_v60  ;;  %v773_v8 = vand.u32 2147483647, %v1073_v54 }
 0x2e9   :  { %v1075_v55 = vpop.eup %1074 }
 0x2ea   :  { %v733_v58 = vrot.slane %v1075_v55, 4  ;;  %1078 = vlog2.f32 %v767_v57  ;;  %v771_v5 = vadd.f32 1.0, %v770_v62  ;;  %vm774_vm4 = vcmp.lt.f32.partialorder %v773_v8, 0.0004427343 }
 0x2ec   :  { %v734_v59 = vadd.f32 %v1075_v55, %v733_v58  ;;  %v772_v16 = vmul.f32 %v1073_v54, %v771_v5 }
 0x2ee   :  { %v735_v63 = vrot.slane %v734_v59, 2 }
 0x2f0   :  { %v1077_v0 = vpop.eup %1076  ;;  %v736_v1 = vadd.f32 %v735_v63, %v734_v59 }
 0x2f1   :  { %v750_v2 = vmul.f32 0.6931472, %v1077_v0 }
 0x2f2   :  { %v737_v6 = vrot.slane %v736_v1, 1 }
 0x2f3   :  { %v756_v7 = vsel %vm755_vm2, %v753_v3, %v750_v2 }
 0x2f4   :  { %v757_v9 = vadd.f32 %v756_v7, %v741_v4  ;;  %v738_v10 = vadd.f32 %v737_v6, %v736_v1  ;;  %v1079_v11 = vpop.eup %1078 }
 0x2f5   :  { %v769_v15 = vmul.f32 0.6931472, %v1079_v11 }
 0x2f6   :  { %v758_v12 = vsel %vm742_vm3, %v716_v35, %v757_v9  ;;  %1080 = vrcp.f32 %v738_v10 }
 0x2f7   :  { %v759_v17 = vadd.f32 1e-06, %v758_v12  ;;  %v775_v19 = vsel %vm774_vm4, %v772_v16, %v769_v15 }
 0x2f8   :  { %v776_v20 = vadd.f32 %v775_v19, %v760_v18 }
 0x2f9   :  { %780 = vst [vmem:[#allocation2 + $0x8] sm:$0xff] %v759_v17 }
 0x2fa   :  { %v777_v21 = vsel %vm761_vm5, %v721_v42, %v776_v20 }
 0x2fb   :  { %v778_v22 = vadd.f32 0.001, %v777_v21 }
 0x2fd   :  { %781 = vst [vmem:[#allocation2 + $0x10] sm:$0xff] %v778_v22 }
 0x300   :  { %v1081_v23 = vpop.eup %1080 }
 0x301   :  { %v740_v24 = vmul.f32 %v1081_v23, %v1075_v55 }
 0x303   :  { %779 = vst [vmem:[#allocation2] sm:$0xff] %v740_v24 }
 0x304   :  { %1093 = shalt.err (!%p1090_p4)
}
 0x305   :  { %s1094_s15 = scalar_lea.hbm %s1415_s7, 384 }
 0x306   :  { %p1095_p5 = scmp.ne.s32.totalorder %s1415_s7, %s1094_s15  ;;  %p1098_p6 = scmp.lt.u32.totalorder %s1094_s15, %s1415_s7 }
 0x308   :  { %p1100_p7 = pnand %p1098_p6, %p1095_p5 }
 0x30a   :  { %1103 = shalt.err (!%p1100_p7)
}
 0x30b   :  { %s1111_s20 = smov 128   ;;  %s1112_s1 = smov 8  }
 0x30c   :  { %793 = dma.vmem_to_hbm [thread:$0]  %s788_s11, 384, %s1415_s7, [#allocation3], %s1111_s20, %s1111_s20, %s1112_s1  }
 0x30d   :  { %1104 = dma.done.wait [#allocation3], 384  }
 0x30e   :  { %1105 = vsyncadd [#allocation3], 4294966912 }
 0x30f   :  { %797 = vsyncpa [#allocation3], 1 }

</bundles_post_ra>
